<compile_context>
chip_gen: v7x
topology: tpu7x:2x2x1
jax: 0.10.0
libtpu: 0.0.40
codegen_flags: <defaults>
</compile_context>

<pallas_src>
import jax
import jax.numpy as jnp
from jax.experimental import pallas as pl
from jax.experimental.pallas import tpu as pltpu


def _conv_bn_relu_kernel(w_ref, x_ref, bias_ref, o_ref):
    # w_ref:    (Cout, Cin)   bf16, 1x1 conv weight with BN scale pre-folded
    # x_ref:    (Cin, THW)    bf16, channel-major pixels of one HW tile
    # bias_ref: (Cout, 1)     f32, folded BN bias = beta - mean * gamma / sqrt(var+eps)
    # o_ref:    (Cout, THW)   f32
    y = jnp.dot(w_ref[...], x_ref[...], preferred_element_type=jnp.float32)
    y = y + bias_ref[...]
    o_ref[...] = jnp.maximum(y, 0.0).astype(o_ref.dtype)


def conv2d_bn_relu_1x1(x_nchw, weight_oihw, gamma, beta, running_mean,
                       running_var, eps=1e-5):
    N, Cin, H, W = x_nchw.shape
    Cout = weight_oihw.shape[0]
    HW = H * W

    # NCHW -> (N, Cin, H*W): pure reshape, no data movement. Cast activations to
    # bf16 for the MXU (accumulation stays f32 inside the kernel).
    x3d = x_nchw.reshape(N, Cin, HW).astype(jnp.bfloat16)

    # Fold BN (eval mode) into the weight (scale) and a per-channel bias.
    scale = gamma * jax.lax.rsqrt(running_var + eps)                      # (Cout,)
    w2d = (weight_oihw[:, :, 0, 0] * scale[:, None]).astype(jnp.bfloat16)  # (Cout, Cin)
    bias = (beta - running_mean * scale).reshape(Cout, 1)                  # (Cout, 1) f32

    # HW tiling: only needed when N==1 (otherwise the batch axis already gives
    # the pipeline multiple steps and the extra grid-step overhead isn't worth it).
    if N == 1 and HW > 256:
        thw = 256                      # multiple of 128; ragged 16-lane tail is fine
    else:
        thw = HW
    num_hw_tiles = pl.cdiv(HW, thw)

    flops = 2 * N * HW * Cin * Cout
    bytes_accessed = (2 * N * Cin * HW          # bf16 activations in
                      + 2 * Cin * Cout          # bf16 weight in
                      + 4 * Cout                # f32 bias in
                      + 4 * N * Cout * HW)      # f32 output out

    out3d = pl.pallas_call(
        _conv_bn_relu_kernel,
        out_shape=jax.ShapeDtypeStruct((N, Cout, HW), jnp.float32),
        grid=(N, num_hw_tiles),
        in_specs=[
            pl.BlockSpec((Cout, Cin), lambda n, h: (0, 0)),
            pl.BlockSpec((None, Cin, thw), lambda n, h: (n, 0, h)),
            pl.BlockSpec((Cout, 1), lambda n, h: (0, 0)),
        ],
        out_specs=pl.BlockSpec((None, Cout, thw), lambda n, h: (n, 0, h)),
        compiler_params=pltpu.CompilerParams(
            dimension_semantics=("parallel", "parallel")),
        cost_estimate=pl.CostEstimate(
            flops=flops, transcendentals=0, bytes_accessed=bytes_accessed),
    )(w2d, x3d, bias)

    # (N, Cout, H*W) -> NCHW: pure reshape, no data movement.
    return out3d.reshape(N, Cout, H, W).astype(x_nchw.dtype)


if __name__ == "__main__":
    key = jax.random.PRNGKey(0)
    k_x, k_w, k_g, k_b = jax.random.split(key, 4)

    N, C, H, W = 1, 168, 28, 28  # shapes implied by the module (1x1 conv 168->168)
    x = jax.random.normal(k_x, (N, C, H, W), dtype=jnp.float32)

    # Deterministic parameter init (synthetic; shapes match the PyTorch module).
    weight = jax.random.normal(k_w, (C, C, 1, 1), dtype=jnp.float32) * 0.05
    gamma = 1.0 + 0.1 * jax.random.normal(k_g, (C,), dtype=jnp.float32)
    beta = 0.1 * jax.random.normal(k_b, (C,), dtype=jnp.float32)
    running_mean = jnp.zeros((C,), dtype=jnp.float32)
    running_var = jnp.ones((C,), dtype=jnp.float32)

    out = conv2d_bn_relu_1x1(x, weight, gamma, beta, running_mean, running_var)
    jax.block_until_ready(out)

    assert out.shape == (N, C, H, W), out.shape
    assert bool(jnp.all(out >= 0.0))

    # Pure-JAX reference (eval-mode BN, f32) for numerical sanity.
    # bf16 matmul operands -> looser tolerance than the previous pure-f32 version.
    eps = 1e-5
    ref = jnp.einsum('oc,nchw->nohw', weight[:, :, 0, 0], x)
    s = (gamma * jax.lax.rsqrt(running_var + eps))[None, :, None, None]
    ref = (ref - running_mean[None, :, None, None]) * s + beta[None, :, None, None]
    ref = jnp.maximum(ref, 0.0)
    assert bool(jnp.allclose(out, ref, rtol=2e-2, atol=2e-2))

    print("KERNEL_OK")
</pallas_src>

<mosaic_0001>
module attributes {stable_mosaic.version = 11 : i64} {
  func.func @_conv_bn_relu_kernel(%arg0: i32, %arg1: i32, %arg2: memref<168x168xbf16, #tpu.memory_space<vmem>>, %arg3: memref<1x168x256xbf16, #tpu.memory_space<vmem>>, %arg4: memref<168x1xf32, #tpu.memory_space<vmem>>, %arg5: memref<1x168x256xf32, #tpu.memory_space<vmem>>) attributes {dimension_semantics = [#tpu.dimension_semantics<parallel>, #tpu.dimension_semantics<parallel>], iteration_bounds = array<i64: 1, 4>, scalar_prefetch = 0 : i64, scratch_operands = 0 : i64, tpu.core_type = #tpu.core_type<tc>, window_params = [{pipeline_mode = #tpu.pipeline_mode<synchronous>, transform_indices = @transform_0, window_bounds = array<i64: 168, 168>}, {transform_indices = @transform_1, window_bounds = array<i64: 1, 168, 256>}, {pipeline_mode = #tpu.pipeline_mode<synchronous>, transform_indices = @transform_2, window_bounds = array<i64: 168, 1>}, {transform_indices = @transform_3, window_bounds = array<i64: 1, 168, 256>}]} {
    %c0 = arith.constant 0 : index
    %c0_0 = arith.constant 0 : index
    %0 = vector.load %arg2[%c0, %c0_0] : memref<168x168xbf16, #tpu.memory_space<vmem>>, vector<168x168xbf16>
    %c0_1 = arith.constant 0 : index
    %c0_2 = arith.constant 0 : index
    %c0_3 = arith.constant 0 : index
    %1 = vector.load %arg3[%c0_1, %c0_2, %c0_3] : memref<1x168x256xbf16, #tpu.memory_space<vmem>>, vector<1x168x256xbf16>
    %2 = vector.shape_cast %1 : vector<1x168x256xbf16> to vector<168x256xbf16>
    %cst = arith.constant dense<0.000000e+00> : vector<168x256xf32>
    %3 = tpu.matmul %0, %2, %cst {dimension_numbers = #tpu.dot_dimension_numbers<[1], [0], [0], [1], [0, 0, 1, 1], [], []>} : vector<168x168xbf16>, vector<168x256xbf16>, vector<168x256xf32> -> vector<168x256xf32>
    %c0_4 = arith.constant 0 : index
    %c0_5 = arith.constant 0 : index
    %4 = vector.load %arg4[%c0_4, %c0_5] : memref<168x1xf32, #tpu.memory_space<vmem>>, vector<168x1xf32>
    %5 = vector.broadcast %4 : vector<168x1xf32> to vector<168x256xf32>
    %6 = arith.addf %3, %5 : vector<168x256xf32>
    %cst_6 = arith.constant 0.000000e+00 : f32
    %7 = vector.broadcast %cst_6 : f32 to vector<168x256xf32>
    %8 = arith.maximumf %6, %7 : vector<168x256xf32>
    %c0_7 = arith.constant 0 : index
    %c0_8 = arith.constant 0 : index
    %c0_9 = arith.constant 0 : index
    %9 = vector.load %arg5[%c0_7, %c0_8, %c0_9] : memref<1x168x256xf32, #tpu.memory_space<vmem>>, vector<1x168x256xf32>
    %10 = vector.shape_cast %9 : vector<1x168x256xf32> to vector<168x256xf32>
    %11 = vector.shape_cast %8 : vector<168x256xf32> to vector<1x168x256xf32>
    tpu.vector_store %arg5[%c0_7, %c0_8, %c0_9], %11 {strides = array<i32>} : memref<1x168x256xf32, #tpu.memory_space<vmem>>, vector<1x168x256xf32>,
    return
  }
  func.func @transform_0(%arg0: i32, %arg1: i32) -> (i32, i32) {
    %c0_i32 = arith.constant 0 : i32
    %c0_i32_0 = arith.constant 0 : i32
    %c0_i32_1 = arith.constant 0 : i32
    return %c0_i32, %c0_i32_0 : i32, i32
  }
  func.func @transform_1(%arg0: i32, %arg1: i32) -> (i32, i32, i32) {
    %c0_i32 = arith.constant 0 : i32
    %c0_i32_0 = arith.constant 0 : i32
    return %arg0, %c0_i32, %arg1 : i32, i32, i32
  }
  func.func @transform_2(%arg0: i32, %arg1: i32) -> (i32, i32) {
    %c0_i32 = arith.constant 0 : i32
    %c0_i32_0 = arith.constant 0 : i32
    %c0_i32_1 = arith.constant 0 : i32
    return %c0_i32, %c0_i32_0 : i32, i32
  }
  func.func @transform_3(%arg0: i32, %arg1: i32) -> (i32, i32, i32) {
    %c0_i32 = arith.constant 0 : i32
    %c0_i32_0 = arith.constant 0 : i32
    return %arg0, %c0_i32, %arg1 : i32, i32, i32
  }
}

</mosaic_0001>

<bundles_post_ra>
// kernel: tpu_custom_call.1
= control target key start
LH: loop header
LB: loop body
LE: loop exit
PB: predicated region body
PF: predicated region fallthrough
CT: control target
= control target key end

     0   :  { %8 = vsyncpa [#allocation3], 0  ;;  %s1769_s0 = inlined_call_operand.vmem [shape: bf16[168,168], index: 0, kind: input, shape index: {}]   ;;  %s1770_s1 = inlined_call_operand.hbm [shape: bf16[1,168,784], index: 1, kind: input, shape index: {}]   ;;  %s1771_s2 = inlined_call_operand.vmem [shape: f32[168,1], index: 2, kind: input, shape index: {}]   ;;  %s1772_s3 = inlined_call_operand.hbm [shape: f32[1,168,784], index: 3, kind: output, shape index: {}]  }
   0x1   :  { %10 = vsyncpa [#allocation3 + $0x1], 0 }
   0x2   :  { %11 = vsyncpa [#allocation4], 0 }
   0x3   :  { %13 = vsyncpa [#allocation4 + $0x1], 0  ;;  %s1337_s12 = smov 0   ;;  %s1339_s13 = smov 0  }
   0x4   :  { %s1341_s14 = smov 0   ;;  %s1343_s15 = smov 0  }
   0x5   :  { %s1345_s16 = smov 0   ;;  %s1347_s17 = smov 0  }
   0x6 LB: > { %s970_s18 = sadd.s32 4294967295, %s1308_s17   ;;  %s971_s19 = sadd.s32 4294967294, %s1308_s17   ;;  %s1308_s17 = sphi %s1347_s17, %s19_s17   ;;  %s1304_s16 = sphi %s1345_s16, %s1781_s16   ;;  %s1300_s15 = sphi %s1343_s15, %s1780_s15   ;;  %s1296_s14 = sphi %s1341_s14, %s1779_s14   ;;  %s1292_s13 = sphi %s1339_s13, %s1778_s13   ;;  %s1288_s12 = sphi %s1337_s12, %s1777_s12  }
   0x7   : > { %s28_s20 = sadd.s32 1, %s1304_s16  ;;  %s61_s21 = sadd.s32 1, %s1296_s14 }
   0x8   : > { %p29_p0 = scmp.ge.s32.totalorder %s28_s20, 4  ;;  %p68_p1 = scmp.ne.s32.totalorder %s1296_s14, %s1292_s13 }
   0x9   : > { %p69_p2 = scmp.eq.s32.totalorder %s1308_s17, 0  ;;  %p74_p3 = scmp.ne.s32.totalorder %s1292_s13, %s1288_s12 }
   0xa   : > { %s1783_s20 = smov (%p29_p0, %s28_s20), 0  ;;  %p75_p5 = scmp.eq.s32.totalorder %s970_s18, 0 }
   0xb   : > { %p70_p4 = por %p69_p2, %p68_p1  ;;  %s57_s22 = ssub.s32 %s1304_s16, %s1783_s20 }
   0xc   : > { %p121_p6 = scmp.eq.s32.totalorder %s970_s18, 3  ;;  %p59_p7 = scmp.eq.s32.totalorder %s57_s22, 0 }
   0xd   : > { %p1380_p8 = por %p75_p5, %p74_p3  ;;  %p127_p10 = scmp.eq.s32.totalorder %s971_s19, 3 }
   0xe   : > { %p1384_p9 = por %p121_p6, %p68_p1  ;;  %p973_p12 = scmp.ge.s32.totalorder %s1308_s17, 4 }
   0xf   : > { %s1389_s25 = scalar_select %p59_p7, %s1296_s14, %s61_s21  }
  0x10   : > { %p1391_p11 = por %p127_p10, %p74_p3  ;;  %149 = sbr.rel (%p973_p12) target bundleno = 59 (0x3b), region = 24 }
  0x12   : > { %s1775_s26 = scalar_select %p1391_p11, 1, 0 }
  0x17   : > { %152 = sbr.rel (!%p70_p4) target bundleno = 59 (0x3b), region = 28  ;;  %s153_s27 = sand.u32 (%p70_p4), 1, %s1296_s14  }
  0x18   : > { %s974_s28 = sshll.u32 (%p70_p4), %s1304_s16, 1  ;;  %s1069_s29 = smul.u32 (%p70_p4), 168, %s153_s27 }
  0x19   : > { %s159_s30 = ssub.s32 (%p70_p4), 7, %s974_s28  ;;  %s1404_s6 = scalar_lea.sflag (%p70_p4), [#allocation3], %s153_s27 }
  0x1a   : > { %p160_p13 = scmp.lt.s32.totalorder (%p70_p4), %s159_s30, 2  ;;  %s157_s7 = scalar_lea.vmem (%p70_p4), [#allocation2], %s1069_s29 }
  0x1e   : > { %s1785_s30 = smov (!%p160_p13, %s159_s30), 2 }
  0x1f   : > { %s1401_s4 = smul.u32 1344, %s1785_s30 }
  0x21   : > { %s164_s5 = ssub.s32 2688, %s1401_s4 }
  0x22   : > { %165 = vsyncadd %s1404_s6, %s164_s5  ;;  %p975_p0 = scmp.ne.s32.totalorder %s1401_s4, 0  ;;  %s1045_s8 = sshll.u32 %s1304_s16, 7 }
  0x23   : > { %s1412_s11 = scalar_lea.hbm %s1770_s1, %s1045_s8  ;;  %s977_s18 = sshll.u32 %s1785_s30, 2 }
  0x24   : > { %s173_s19 = sshll.u32 %s157_s7, 4  ;;  %s1198_s21 = scalar_lea.hbm %s1412_s11, %s1401_s4  ;;  %s1415_s19 = int_to_ptr.vmem [resolvable:$true] %s173_s19 }
  0x25   : > { %p1199_p1 = scmp.ne.s32.totalorder %s1412_s11, %s1198_s21  ;;  %s1202_s28 = scalar_lea.hbm %s1770_s1, 9408 }
  0x26   : > { %p1203_p4 = scmp.lt.u32.totalorder %s1412_s11, %s1770_s1  ;;  %p1204_p5 = scmp.lt.u32.totalorder %s1202_s28, %s1198_s21 }
  0x27   : > { %p1200_p2 = pnand %p1199_p1, %p975_p0  ;;  %p1206_p7 = scmp.lt.u32.totalorder %s1198_s21, %s1412_s11 }
  0x28   : > { %p1205_p6 = por %p1204_p5, %p1203_p4 }
  0x29   : > { %p1201_p3 = pneg %p1200_p2 }
  0x2a   : > { %p1207_p10 = por %p1206_p7, %p1205_p6 }
  0x2c   : > { %p1208_p12 = pnand %p1207_p10, %p1201_p3 }
  0x2e   : > { %1211 = shalt.err (!%p1208_p12)
}
  0x2f   : > { %s1212_s7 = scalar_lea.vmem %s1415_s19, %s1401_s4  ;;  %s1310_s8 = smov [#allocation2]  }
  0x30   : > { %p1213_p13 = scmp.ne.s32.totalorder %s1415_s19, %s1212_s7  ;;  %s1216_s9 = sshll.u32 %s1310_s8, 4  ;;  %s1217_s9 = int_to_ptr.vmem [resolvable:$false] %s1216_s9 }
  0x31   : > { %s1218_s10 = scalar_lea.vmem %s1217_s9, 5376  ;;  %p1219_p11 = scmp.lt.s32.totalorder %s1415_s19, %s1217_s9 }
  0x32   : > { %p1214_p1 = pnand %p1213_p13, %p975_p0  ;;  %p1220_p4 = scmp.lt.s32.totalorder %s1218_s10, %s1212_s7 }
  0x34   : > { %p1215_p2 = pneg %p1214_p1  ;;  %p1221_p5 = por %p1220_p4, %p1219_p11 }
  0x36   : > { %p1222_p6 = pnand %p1221_p5, %p1215_p2 }
  0x38   : > { %1225 = shalt.err (!%p1222_p6)
}
  0x39   : > { %s1311_s21 = smov 448   ;;  %s1312_s22 = smov 128  }
  0x3a   : > { %179 = dma.hbm_to_vmem [thread:$0]  (%p975_p0), %s1412_s11, %s1401_s4, %s1415_s19, %s1404_s6, %s1311_s21, %s1312_s22, %s977_s18  }
  0x3b PF: > { %p980_p3 = scmp.ge.s32.totalorder %s1308_s17, 1  ;;  %p181_p7 = scmp.lt.s32.totalorder %s1308_s17, 5 }
  0x3d   : > { %p182_p11 = pnand %p980_p3, %p181_p7 }
  0x3e   : > { %s1447_s27 = sand.u32 (!%p182_p11), 1, %s1292_s13  }
  0x3f   : > { %185 = sbr.rel (%p182_p11) target bundleno = 407 (0x197), region = 32  ;;  %s188_s29 = scalar_lea.sflag (!%p182_p11), [#allocation3], %s1447_s27 }
  0x40   : > { %s1070_s28 = smul.u32 (!%p182_p11), 168, %s1447_s27 }
  0x42   : > { %s1451_s5 = scalar_lea.vmem (!%p182_p11), [#allocation2], %s1070_s28 }
  0x46   : > { %1279 = dma.done.wait (%p1380_p8), %s188_s29, 2688  }
  0x47   : > { %1281 = vsyncadd (%p1380_p8), %s188_s29, 4294964608  ;;  %v1313_v0 = vmov 0   ;;  %v1134_v1 = vld [vmem:[%s1451_s5 + $0x4] ss:$8 sps:$4 sm:$0xff]   ;;  %v1136_v2 = vld [vmem:[%s1451_s5] ss:$8 sps:$4 sm:$0xff]  }
  0x48   : > { %1132 = vset.pattern.permute.xlu0 %v1313_v0  ;;  %1133 = vset.pattern.permute.xlu1 %v1313_v0  ;;  %v1137_v3 = vld [vmem:[%s1451_s5 + $0x14] ss:$8 sps:$4 sm:$0xff]   ;;  %v1139_v4 = vld [vmem:[%s1451_s5 + $0x10] ss:$8 sps:$4 sm:$0xff]   ;;  %v1140_v5 = vld [vmem:[%s1451_s5 + $0x24] ss:$8 sps:$4 sm:$0xff]  }
  0x49   : > { %635 = vmatprep.subr.bf16.mxu0 %v1134_v1  ;;  %1047 = vmatprep.subr.bf16.mxu1 %v1134_v1  ;;  %v1142_v6 = vld [vmem:[%s1451_s5 + $0x20] ss:$8 sps:$4 sm:$0xff]   ;;  %v1143_v7 = vld [vmem:[%s1451_s5 + $0x34] ss:$8 sps:$4 sm:$0xff]   ;;  %v1145_v8 = vld [vmem:[%s1451_s5 + $0x30] ss:$8 sps:$4 sm:$0xff]  }
  0x4a   : > { %636 = vmatpush1.bf16.msra.mxu0 %v1136_v2  ;;  %1058 = vmatpush1.bf16.msra.mxu1 %v1136_v2  ;;  %v1146_v9 = vld [vmem:[%s1451_s5 + $0x44] ss:$8 sps:$4 sm:$0xff]   ;;  %v1148_v10 = vld [vmem:[%s1451_s5 + $0x40] ss:$8 sps:$4 sm:$0xff]   ;;  %vm594_vm0 = vcmask 326656   ;;  %v270_v23 = vld [vmem:[%s1771_s2 + $0x18] sm:$0xff] }
  0x4b   : > { %637 = vmatprep.subr.bf16.mxu0 %v1137_v3  ;;  %1048 = vmatprep.subr.bf16.mxu1 %v1137_v3  ;;  %v1168_v11 = vld [vmem:[%s1769_s0 + $0x4] ss:$8 sps:$4 sm:$0xff]   ;;  %v1151_v14 = vld [vmem:[%s1451_s5 + $0x50] ss:$8 sps:$4 sm:$0xff]   ;;  %v1154_v16 = vld [vmem:[%s1451_s5 + $0x60] ss:$8 sps:$4 sm:$0xff]  }
  0x4c   : > { %v1149_v12 = vld [vmem:[%s1451_s5 + $0x54] ss:$8 sps:$4 sm:$0xff]   ;;  %1026 = vmatprep.mubr.msk.bf16.mxu0 %vm594_vm0, %v1168_v11  ;;  %v1152_v15 = vld [vmem:[%s1451_s5 + $0x64] ss:$8 sps:$4 sm:$0xff]   ;;  %v1157_v18 = vld [vmem:[%s1451_s5 + $0x70] ss:$8 sps:$4 sm:$0xff]  }
  0x4d   : > { %v1171_v13 = vld [vmem:[%s1769_s0 + $0x64] ss:$8 sps:$4 sm:$0xff]   ;;  %v269_v21 = vld [vmem:[%s1771_s2 + $0x10] sm:$0xff]  ;;  %vm628_vm1 = vcmask 1043456   ;;  %v274_v33 = vld [vmem:[%s1771_s2 + $0x38] sm:$0xff]  ;;  %s861_s19 = scalar_lea.sflag [#allocation4], %s1447_s27 }
  0x4e   : > { %638 = vmatpush1.bf16.msra.mxu0 %v1139_v4  ;;  %1059 = vmatpush1.bf16.msra.mxu1 %v1139_v4  ;;  %v1155_v17 = vld [vmem:[%s1451_s5 + $0x74] ss:$8 sps:$4 sm:$0xff]   ;;  %v1158_v20 = vld [vmem:[%s1451_s5 + $0x84] ss:$8 sps:$4 sm:$0xff]   ;;  %v1160_v24 = vld [vmem:[%s1451_s5 + $0x80] ss:$8 sps:$4 sm:$0xff]  }
  0x4f   : > { %639 = vmatprep.subr.bf16.mxu0 %v1140_v5  ;;  %1049 = vmatprep.subr.bf16.mxu1 %v1140_v5  ;;  %v267_v19 = vld [vmem:[%s1771_s2] sm:$0xff]  ;;  %v268_v22 = vld [vmem:[%s1771_s2 + $0x8] sm:$0xff]  ;;  %v273_v32 = vld [vmem:[%s1771_s2 + $0x30] sm:$0xff]  ;;  %s1037_s7 = sshll.u32 (%p1384_p9), %s1300_s15, 1 }
  0x50   : > { %1032 = vmatprep.mubr.msk.bf16.mxu1 %vm594_vm0, %v1171_v13  ;;  %290 = vperm.xlu0 %1132, %v267_v19   ;;  %v1161_v25 = vld [vmem:[%s1451_s5 + $0x94] ss:$8 sps:$4 sm:$0xff]   ;;  %v266_v26 = vld [vmem:[%s1451_s5 + $0xa0] sm:$0xff]  ;;  %v1163_v29 = vld [vmem:[%s1451_s5 + $0x90] ss:$8 sps:$4 sm:$0xff]   ;;  %s1071_s5 = smul.u32 336, %s1447_s27 }
  0x51   : > { %300 = vperm.xlu1 %1133, %v269_v21   ;;  %v271_v27 = vld [vmem:[%s1771_s2 + $0x20] sm:$0xff]  ;;  %v272_v28 = vld [vmem:[%s1771_s2 + $0x28] sm:$0xff]  ;;  %v1024_v30 = vcombine.high %v266_v26, %v266_v26  ;;  %v1023_v31 = vcombine.low %v266_v26, %v266_v26  ;;  %v1172_v39 = vld [vmem:[%s1769_s0 + $0x14] ss:$8 sps:$4 sm:$0xff]   ;;  %s869_s8 = ssub.s32 (%p1384_p9), 7, %s1037_s7 }
  0x52   : > { %640 = vmatpush1.bf16.msra.mxu0 %v1142_v6  ;;  %1060 = vmatpush1.bf16.msra.mxu1 %v1142_v6  ;;  %v1166_v35 = vld [vmem:[%s1769_s0] ss:$8 sps:$4 sm:$0xff]   ;;  %v1174_v40 = vld [vmem:[%s1769_s0 + $0x74] ss:$8 sps:$4 sm:$0xff]   ;;  %v1176_v43 = vld [vmem:[%s1769_s0 + $0x10] ss:$8 sps:$4 sm:$0xff]  }
  0x53   : > { %641 = vmatprep.subr.bf16.mxu0 %v1143_v7  ;;  %1050 = vmatprep.subr.bf16.mxu1 %v1143_v7  ;;  %v630_v34 = vsel %vm628_vm1, %v1023_v31, 0  ;;  %v1169_v36 = vld [vmem:[%s1769_s0 + $0x60] ss:$8 sps:$4 sm:$0xff]   ;;  %v277_v41 = vld [vmem:[%s1771_s2 + $0x50] sm:$0xff]  ;;  %v278_v42 = vld [vmem:[%s1771_s2 + $0x58] sm:$0xff]  ;;  %s1634_s18 = scalar_lea.vmem [#allocation5], %s1071_s5 }
  0x54   : > { %295 = vperm.xlu0 %1132, %v268_v22   ;;  %v275_v37 = vld [vmem:[%s1771_s2 + $0x40] sm:$0xff]  ;;  %v276_v38 = vld [vmem:[%s1771_s2 + $0x48] sm:$0xff]  ;;  %v1177_v44 = vld [vmem:[%s1769_s0 + $0x70] ss:$8 sps:$4 sm:$0xff]   ;;  %p870_p8 = scmp.lt.s32.totalorder (%p1384_p9), %s869_s8, 2 }
  0x55   : > { %305 = vperm.xlu1 %1133, %v270_v23   ;;  %v279_v45 = vld [vmem:[%s1771_s2 + $0x60] sm:$0xff]  ;;  %v280_v46 = vld [vmem:[%s1771_s2 + $0x68] sm:$0xff]  ;;  %v281_v49 = vld [vmem:[%s1771_s2 + $0x70] sm:$0xff] }
  0x56   : > { %642 = vmatpush1.bf16.msra.mxu0 %v1145_v8  ;;  %1061 = vmatpush1.bf16.msra.mxu1 %v1145_v8  ;;  %v1178_v47 = vld [vmem:[%s1769_s0 + $0x24] ss:$8 sps:$4 sm:$0xff]   ;;  %v282_v50 = vld [vmem:[%s1771_s2 + $0x78] sm:$0xff]  ;;  %v1182_v51 = vld [vmem:[%s1769_s0 + $0x20] ss:$8 sps:$4 sm:$0xff]  }
  0x57   : > { %643 = vmatprep.subr.bf16.mxu0 %v1146_v9  ;;  %1051 = vmatprep.subr.bf16.mxu1 %v1146_v9  ;;  %v1180_v48 = vld [vmem:[%s1769_s0 + $0x84] ss:$8 sps:$4 sm:$0xff]   ;;  %v1183_v52 = vld [vmem:[%s1769_s0 + $0x80] ss:$8 sps:$4 sm:$0xff]   ;;  %v1184_v55 = vld [vmem:[%s1769_s0 + $0x34] ss:$8 sps:$4 sm:$0xff]  }
  0x58   : > { %310 = vperm.xlu0 %1132, %v271_v27   ;;  %v283_v53 = vld [vmem:[%s1771_s2 + $0x80] sm:$0xff]  ;;  %v284_v54 = vld [vmem:[%s1771_s2 + $0x88] sm:$0xff]  ;;  %v1186_v56 = vld [vmem:[%s1769_s0 + $0x94] ss:$8 sps:$4 sm:$0xff]  }
  0x59   : > { %315 = vperm.xlu1 %1133, %v272_v28   ;;  %v285_v57 = vld [vmem:[%s1771_s2 + $0x90] sm:$0xff]  ;;  %v286_v58 = vld [vmem:[%s1771_s2 + $0x98] sm:$0xff]  ;;  %v245_v59 = vld [vmem:[%s1769_s0 + $0xa0] sm:$0xff] }
  0x5a   : > { %644 = vmatpush1.bf16.msra.mxu0 %v1148_v10  ;;  %1062 = vmatpush1.bf16.msra.mxu1 %v1148_v10  ;;  %v1188_v60 = vld [vmem:[%s1769_s0 + $0x30] ss:$8 sps:$4 sm:$0xff]   ;;  %v287_v62 = vld [vmem:[%s1771_s2 + $0xa0] sm:$0xff]  ;;  %v1002_v0 = vcombine.high %v245_v59, %v245_v59  ;;  %v1001_v2 = vcombine.low %v245_v59, %v245_v59  ;;  %v1195_v3 = vld [vmem:[%s1769_s0 + $0x54] ss:$8 sps:$4 sm:$0xff]  }
  0x5b   : > { %645 = vmatprep.subr.bf16.mxu0 %v1149_v12  ;;  %1052 = vmatprep.subr.bf16.mxu1 %v1149_v12  ;;  %v1189_v61 = vld [vmem:[%s1769_s0 + $0x90] ss:$8 sps:$4 sm:$0xff]   ;;  %v1190_v63 = vld [vmem:[%s1769_s0 + $0x44] ss:$8 sps:$4 sm:$0xff]   ;;  %v1193_v1 = vld [vmem:[%s1769_s0 + $0x40] ss:$8 sps:$4 sm:$0xff]  }
  0x5c   : > { %320 = vperm.xlu0 %1132, %v273_v32   ;;  %v1197_v4 = vld [vmem:[%s1769_s0 + $0x50] ss:$8 sps:$4 sm:$0xff]  }
  0x5d   : > { %325 = vperm.xlu1 %1133, %v274_v33  }
  0x5e   : > { %646 = vmatpush1.bf16.msra.mxu0 %v1151_v14  ;;  %1063 = vmatpush1.bf16.msra.mxu1 %v1151_v14 }
  0x5f   : > { %647 = vmatprep.subr.bf16.mxu0 %v1152_v15  ;;  %1053 = vmatprep.subr.bf16.mxu1 %v1152_v15 }
  0x60   : > { %330 = vperm.xlu0 %1132, %v275_v37  }
  0x61   : > { %335 = vperm.xlu1 %1133, %v276_v38  }
  0x62   : > { %648 = vmatpush1.bf16.msra.mxu0 %v1154_v16  ;;  %1064 = vmatpush1.bf16.msra.mxu1 %v1154_v16 }
  0x63   : > { %649 = vmatprep.subr.bf16.mxu0 %v1155_v17  ;;  %1054 = vmatprep.subr.bf16.mxu1 %v1155_v17 }
  0x64   : > { %340 = vperm.xlu0 %1132, %v277_v41  }
  0x65   : > { %345 = vperm.xlu1 %1133, %v278_v42  }
  0x66   : > { %650 = vmatpush1.bf16.msra.mxu0 %v1157_v18  ;;  %1065 = vmatpush1.bf16.msra.mxu1 %v1157_v18 }
  0x67   : > { %651 = vmatprep.subr.bf16.mxu0 %v1158_v20  ;;  %1055 = vmatprep.subr.bf16.mxu1 %v1158_v20 }
  0x68   : > { %350 = vperm.xlu0 %1132, %v279_v45  }
  0x69   : > { %355 = vperm.xlu1 %1133, %v280_v46  }
  0x6a   : > { %652 = vmatpush1.bf16.msra.mxu0 %v1160_v24  ;;  %1066 = vmatpush1.bf16.msra.mxu1 %v1160_v24 }
  0x6b   : > { %653 = vmatprep.subr.bf16.mxu0 %v1161_v25  ;;  %1056 = vmatprep.subr.bf16.mxu1 %v1161_v25 }
  0x6c   : > { %360 = vperm.xlu0 %1132, %v281_v49  }
  0x6d   : > { %365 = vperm.xlu1 %1133, %v282_v50  }
  0x6e   : > { %654 = vmatpush1.bf16.msra.mxu0 %v1163_v29  ;;  %1067 = vmatpush1.bf16.msra.mxu1 %v1163_v29 }
  0x6f   : > { %1025 = vmatprep.subr.msk.bf16.mxu0 %vm628_vm1, %v1024_v30  ;;  %1057 = vmatprep.subr.msk.bf16.mxu1 %vm628_vm1, %v1024_v30 }
  0x70   : > { %370 = vperm.xlu0 %1132, %v283_v53  }
  0x71   : > { %375 = vperm.xlu1 %1133, %v284_v54  }
  0x72   : > { %656 = vmatpush1.bf16.msra.mxu0 %v630_v34  ;;  %1068 = vmatpush1.bf16.msra.mxu1 %v630_v34 }
  0x74   : > { %380 = vperm.xlu0 %1132, %v285_v57  }
  0x75   : > { %668 = vmatmul.mubr.bf16.vlgmr.msra.gmra.mrb[0].mxu0 %v1166_v35  ;;  %728 = vmatmul.mubr.bf16.vlgmr.msra.gmra.mrb[0].mxu1 %v1169_v36 }
  0x76   : > { %1027 = vmatprep.mubr.msk.bf16.mxu0 %vm594_vm0, %v1172_v39  ;;  %1033 = vmatprep.mubr.msk.bf16.mxu1 %vm594_vm0, %v1174_v40 }
  0x77   : > { %385 = vperm.xlu1 %1133, %v286_v58  }
  0x78   : > { %390 = vperm.xlu0 %1132, %v287_v62  }
  0x7d   : > { %678 = vmatmul.mubr.bf16.gmra.mrb[4].mxu0 %v1176_v43  ;;  %738 = vmatmul.mubr.bf16.gmra.mrb[4].mxu1 %v1177_v44 }
  0x7e   : > { %1028 = vmatprep.mubr.msk.bf16.mxu0 %vm594_vm0, %v1178_v47  ;;  %1034 = vmatprep.mubr.msk.bf16.mxu1 %vm594_vm0, %v1180_v48 }
  0x85   : > { %688 = vmatmul.mubr.bf16.gmra.mrb[8].mxu0 %v1182_v51  ;;  %748 = vmatmul.mubr.bf16.gmra.mrb[8].mxu1 %v1183_v52 }
  0x86   : > { %1029 = vmatprep.mubr.msk.bf16.mxu0 %vm594_vm0, %v1184_v55  ;;  %1035 = vmatprep.mubr.msk.bf16.mxu1 %vm594_vm0, %v1186_v56 }
  0x8d   : > { %698 = vmatmul.mubr.bf16.gmra.mrb[12].mxu0 %v1188_v60  ;;  %758 = vmatmul.mubr.bf16.gmra.mrb[12].mxu1 %v1189_v61 }
  0x8e   : > { %1030 = vmatprep.mubr.msk.bf16.mxu0 %vm594_vm0, %v1190_v63  ;;  %1036 = vmatprep.mubr.msk.bf16.mxu1 %vm594_vm0, %v1002_v0 }
  0x95   : > { %708 = vmatmul.mubr.bf16.gmra.mrb[16].mxu0 %v1193_v1  ;;  %768 = vmatmul.mubr.bf16.gmra.mrb[16].mxu1 %v1001_v2 }
  0x96   : > { %1031 = vmatprep.mubr.msk.bf16.mxu0 %vm594_vm0, %v1195_v3 }
  0x9d   : > { %718 = vmatmul.mubr.bf16.gmra.mrb[20].mxu0 %v1197_v4 }
  0xcf   : > { %v291_v5 = vpop.permute.xlu0 %290 }
  0xd0   : > { %v301_v6 = vpop.permute.xlu1 %300 }
  0xd3   : > { %v296_v7 = vpop.permute.xlu0 %295 }
  0xd4   : > { %v1615_v8 = vpop.permute.xlu1 %305 }
  0xd7   : > { %v1617_v9 = vpop.permute.xlu0 %310 }
  0xd8   : > { %v1619_v10 = vpop.permute.xlu1 %315 }
  0xdb   : > { %v1621_v11 = vpop.permute.xlu0 %320 }
  0xdc   : > { %v1623_v12 = vpop.permute.xlu1 %325 }
  0xdf   : > { %v1625_v13 = vpop.permute.xlu0 %330 }
  0xe0   : > { %v1627_v14 = vpop.permute.xlu1 %335 }
  0xe3   : > { %v1629_v15 = vpop.permute.xlu0 %340 }
  0xe4   : > { %v1631_v16 = vpop.permute.xlu1 %345 }
  0xe7   : > { %v351_v17 = vpop.permute.xlu0 %350 }
  0xe8   : > { %v356_v18 = vpop.permute.xlu1 %355 }
  0xeb   : > { %v361_v43 = vpop.permute.xlu0 %360 }
  0xec   : > { %v366_v44 = vpop.permute.xlu1 %365 }
 0x148   : > { %v669_v19 = vpop.f32.mrb[0].mxu0  ;;  %v729_v20 = vpop.f32.mrb[0].mxu1 }
 0x149   : > { %v670_v21 = vadd.f32 %v669_v19, %v291_v5  ;;  %v671_v22 = vpop.f32.mrb[1].mxu0  ;;  %v730_v23 = vadd.f32 %v729_v20, %v351_v17  ;;  %v731_v24 = vpop.f32.mrb[1].mxu1 }
 0x14a   : > { %v672_v25 = vadd.f32 %v671_v22, %v291_v5  ;;  %v673_v26 = vpop.f32.mrb[2].mxu0  ;;  %v732_v27 = vadd.f32 %v731_v24, %v351_v17  ;;  %v733_v28 = vpop.f32.mrb[2].mxu1 }
 0x14b   : > { %v776_v29 = vmax.f32 %v670_v21, 0.0  ;;  %v674_v30 = vadd.f32 %v673_v26, %v296_v7  ;;  %v800_v31 = vmax.f32 %v730_v23, 0.0  ;;  %v675_v32 = vpop.f32.mrb[3].mxu0  ;;  %v734_v33 = vadd.f32 %v733_v28, %v356_v18  ;;  %v735_v34 = vpop.f32.mrb[3].mxu1 }
 0x14c   : > { %v777_v35 = vmax.f32 %v672_v25, 0.0  ;;  %v676_v36 = vadd.f32 %v675_v32, %v296_v7  ;;  %v801_v37 = vmax.f32 %v732_v27, 0.0  ;;  %v736_v38 = vadd.f32 %v735_v34, %v356_v18  ;;  %v371_v5 = vpop.permute.xlu0 %370 }
 0x14d   : > { %818 = vst [vmem:[%s1634_s18] sm:$0xff] %v776_v29  ;;  %v778_v39 = vmax.f32 %v674_v30, 0.0  ;;  %842 = vst [vmem:[%s1634_s18 + $0xc0] sm:$0xff] %v800_v31  ;;  %v802_v40 = vmax.f32 %v734_v33, 0.0 }
 0x14e   : > { %819 = vst [vmem:[%s1634_s18 + $0x8] sm:$0xff] %v777_v35  ;;  %v779_v41 = vmax.f32 %v676_v36, 0.0  ;;  %843 = vst [vmem:[%s1634_s18 + $0xc8] sm:$0xff] %v801_v37  ;;  %v803_v42 = vmax.f32 %v736_v38, 0.0 }
 0x14f   : > { %820 = vst [vmem:[%s1634_s18 + $0x10] sm:$0xff] %v778_v39  ;;  %844 = vst [vmem:[%s1634_s18 + $0xd0] sm:$0xff] %v802_v40 }
 0x150   : > { %821 = vst [vmem:[%s1634_s18 + $0x18] sm:$0xff] %v779_v41  ;;  %845 = vst [vmem:[%s1634_s18 + $0xd8] sm:$0xff] %v803_v42  ;;  %v679_v45 = vpop.f32.mrb[4].mxu0  ;;  %v739_v46 = vpop.f32.mrb[4].mxu1 }
 0x151   : > { %v680_v47 = vadd.f32 %v679_v45, %v301_v6  ;;  %v740_v48 = vadd.f32 %v739_v46, %v361_v43  ;;  %v681_v49 = vpop.f32.mrb[5].mxu0  ;;  %v741_v50 = vpop.f32.mrb[5].mxu1 }
 0x152   : > { %v682_v51 = vadd.f32 %v681_v49, %v301_v6  ;;  %v742_v52 = vadd.f32 %v741_v50, %v361_v43  ;;  %v683_v53 = vpop.f32.mrb[6].mxu0  ;;  %v743_v54 = vpop.f32.mrb[6].mxu1 }
 0x153   : > { %v780_v55 = vmax.f32 %v680_v47, 0.0  ;;  %v804_v56 = vmax.f32 %v740_v48, 0.0  ;;  %v684_v57 = vadd.f32 %v683_v53, %v1615_v8  ;;  %v744_v58 = vadd.f32 %v743_v54, %v366_v44  ;;  %v685_v59 = vpop.f32.mrb[7].mxu0  ;;  %v745_v60 = vpop.f32.mrb[7].mxu1 }
 0x154   : > { %v781_v61 = vmax.f32 %v682_v51, 0.0  ;;  %v805_v62 = vmax.f32 %v742_v52, 0.0  ;;  %v686_v63 = vadd.f32 %v685_v59, %v1615_v8  ;;  %v746_v0 = vadd.f32 %v745_v60, %v366_v44  ;;  %v376_v6 = vpop.permute.xlu1 %375  ;;  %v381_v38 = vpop.permute.xlu0 %380 }
 0x155   : > { %822 = vst [vmem:[%s1634_s18 + $0x20] sm:$0xff] %v780_v55  ;;  %846 = vst [vmem:[%s1634_s18 + $0xe0] sm:$0xff] %v804_v56  ;;  %v782_v1 = vmax.f32 %v684_v57, 0.0  ;;  %v806_v2 = vmax.f32 %v744_v58, 0.0 }
 0x156   : > { %823 = vst [vmem:[%s1634_s18 + $0x28] sm:$0xff] %v781_v61  ;;  %847 = vst [vmem:[%s1634_s18 + $0xe8] sm:$0xff] %v805_v62  ;;  %v783_v3 = vmax.f32 %v686_v63, 0.0  ;;  %v807_v4 = vmax.f32 %v746_v0, 0.0 }
 0x157   : > { %824 = vst [vmem:[%s1634_s18 + $0x30] sm:$0xff] %v782_v1  ;;  %848 = vst [vmem:[%s1634_s18 + $0xf0] sm:$0xff] %v806_v2 }
 0x158   : > { %825 = vst [vmem:[%s1634_s18 + $0x38] sm:$0xff] %v783_v3  ;;  %849 = vst [vmem:[%s1634_s18 + $0xf8] sm:$0xff] %v807_v4  ;;  %v689_v7 = vpop.f32.mrb[8].mxu0  ;;  %v749_v17 = vpop.f32.mrb[8].mxu1 }
 0x159   : > { %v690_v18 = vadd.f32 %v689_v7, %v1617_v9  ;;  %v750_v8 = vadd.f32 %v749_v17, %v371_v5  ;;  %v691_v19 = vpop.f32.mrb[9].mxu0  ;;  %v751_v20 = vpop.f32.mrb[9].mxu1 }
 0x15a   : > { %v692_v21 = vadd.f32 %v691_v19, %v1617_v9  ;;  %v752_v22 = vadd.f32 %v751_v20, %v371_v5  ;;  %v693_v23 = vpop.f32.mrb[10].mxu0  ;;  %v753_v24 = vpop.f32.mrb[10].mxu1 }
 0x15b   : > { %v784_v25 = vmax.f32 %v690_v18, 0.0  ;;  %v808_v26 = vmax.f32 %v750_v8, 0.0  ;;  %v694_v27 = vadd.f32 %v693_v23, %v1619_v10  ;;  %v754_v28 = vadd.f32 %v753_v24, %v376_v6  ;;  %v695_v29 = vpop.f32.mrb[11].mxu0  ;;  %v755_v30 = vpop.f32.mrb[11].mxu1 }
 0x15c   : > { %v785_v31 = vmax.f32 %v692_v21, 0.0  ;;  %v809_v32 = vmax.f32 %v752_v22, 0.0  ;;  %v696_v9 = vadd.f32 %v695_v29, %v1619_v10  ;;  %v756_v33 = vadd.f32 %v755_v30, %v376_v6  ;;  %v386_v39 = vpop.permute.xlu1 %385  ;;  %v391_v62 = vpop.permute.xlu0 %390 }
 0x15d   : > { %826 = vst [vmem:[%s1634_s18 + $0x40] sm:$0xff] %v784_v25  ;;  %850 = vst [vmem:[%s1634_s18 + $0x100] sm:$0xff] %v808_v26  ;;  %v786_v34 = vmax.f32 %v694_v27, 0.0  ;;  %v810_v35 = vmax.f32 %v754_v28, 0.0 }
 0x15e   : > { %827 = vst [vmem:[%s1634_s18 + $0x48] sm:$0xff] %v785_v31  ;;  %851 = vst [vmem:[%s1634_s18 + $0x108] sm:$0xff] %v809_v32  ;;  %v787_v36 = vmax.f32 %v696_v9, 0.0  ;;  %v811_v37 = vmax.f32 %v756_v33, 0.0 }
 0x15f   : > { %828 = vst [vmem:[%s1634_s18 + $0x50] sm:$0xff] %v786_v34  ;;  %852 = vst [vmem:[%s1634_s18 + $0x110] sm:$0xff] %v810_v35 }
 0x160   : > { %829 = vst [vmem:[%s1634_s18 + $0x58] sm:$0xff] %v787_v36  ;;  %853 = vst [vmem:[%s1634_s18 + $0x118] sm:$0xff] %v811_v37  ;;  %v699_v40 = vpop.f32.mrb[12].mxu0  ;;  %v759_v41 = vpop.f32.mrb[12].mxu1 }
 0x161   : > { %v700_v42 = vadd.f32 %v699_v40, %v1621_v11  ;;  %v760_v10 = vadd.f32 %v759_v41, %v381_v38  ;;  %v701_v43 = vpop.f32.mrb[13].mxu0  ;;  %v761_v44 = vpop.f32.mrb[13].mxu1 }
 0x162   : > { %v702_v45 = vadd.f32 %v701_v43, %v1621_v11  ;;  %v762_v46 = vadd.f32 %v761_v44, %v381_v38  ;;  %v703_v47 = vpop.f32.mrb[14].mxu0  ;;  %v763_v48 = vpop.f32.mrb[14].mxu1 }
 0x163   : > { %v788_v49 = vmax.f32 %v700_v42, 0.0  ;;  %v812_v50 = vmax.f32 %v760_v10, 0.0  ;;  %v704_v51 = vadd.f32 %v703_v47, %v1623_v12  ;;  %v764_v52 = vadd.f32 %v763_v48, %v386_v39  ;;  %v705_v53 = vpop.f32.mrb[15].mxu0  ;;  %v765_v54 = vpop.f32.mrb[15].mxu1 }
 0x164   : > { %v789_v55 = vmax.f32 %v702_v45, 0.0  ;;  %v813_v56 = vmax.f32 %v762_v46, 0.0  ;;  %v706_v11 = vadd.f32 %v705_v53, %v1623_v12  ;;  %v766_v57 = vadd.f32 %v765_v54, %v386_v39 }
 0x165   : > { %830 = vst [vmem:[%s1634_s18 + $0x60] sm:$0xff] %v788_v49  ;;  %854 = vst [vmem:[%s1634_s18 + $0x120] sm:$0xff] %v812_v50  ;;  %v790_v58 = vmax.f32 %v704_v51, 0.0  ;;  %v814_v59 = vmax.f32 %v764_v52, 0.0 }
 0x166   : > { %831 = vst [vmem:[%s1634_s18 + $0x68] sm:$0xff] %v789_v55  ;;  %855 = vst [vmem:[%s1634_s18 + $0x128] sm:$0xff] %v813_v56  ;;  %v791_v60 = vmax.f32 %v706_v11, 0.0  ;;  %v815_v61 = vmax.f32 %v766_v57, 0.0 }
 0x167   : > { %832 = vst [vmem:[%s1634_s18 + $0x70] sm:$0xff] %v790_v58  ;;  %856 = vst [vmem:[%s1634_s18 + $0x130] sm:$0xff] %v814_v59 }
 0x168   : > { %833 = vst [vmem:[%s1634_s18 + $0x78] sm:$0xff] %v791_v60  ;;  %857 = vst [vmem:[%s1634_s18 + $0x138] sm:$0xff] %v815_v61  ;;  %v709_v63 = vpop.f32.mrb[16].mxu0  ;;  %v769_v0 = vpop.f32.mrb[16].mxu1 }
 0x169   : > { %v710_v1 = vadd.f32 %v709_v63, %v1625_v13  ;;  %v770_v12 = vadd.f32 %v769_v0, %v391_v62  ;;  %v711_v2 = vpop.f32.mrb[17].mxu0  ;;  %v771_v3 = vpop.f32.mrb[17].mxu1 }
 0x16a   : > { %v712_v4 = vadd.f32 %v711_v2, %v1625_v13  ;;  %v772_v5 = vadd.f32 %v771_v3, %v391_v62  ;;  %v713_v6 = vpop.f32.mrb[18].mxu0  ;;  %v773_v7 = vpop.f32.mrb[18].mxu1 }
 0x16b   : > { %v792_v17 = vmax.f32 %v710_v1, 0.0  ;;  %v816_v18 = vmax.f32 %v770_v12, 0.0  ;;  %v714_v8 = vadd.f32 %v713_v6, %v1627_v14  ;;  %v715_v19 = vpop.f32.mrb[19].mxu0  ;;  %v774_v20 = vpop.f32.mrb[19].mxu1 }
 0x16c   : > { %v793_v21 = vmax.f32 %v712_v4, 0.0  ;;  %v817_v22 = vmax.f32 %v772_v5, 0.0  ;;  %v716_v23 = vadd.f32 %v715_v19, %v1627_v14 }
 0x16d   : > { %834 = vst [vmem:[%s1634_s18 + $0x80] sm:$0xff] %v792_v17  ;;  %858 = vst [vmem:[%s1634_s18 + $0x140] sm:$0xff] %v816_v18  ;;  %v794_v24 = vmax.f32 %v714_v8, 0.0 }
 0x16e   : > { %835 = vst [vmem:[%s1634_s18 + $0x88] sm:$0xff] %v793_v21  ;;  %859 = vst [vmem:[%s1634_s18 + $0x148] sm:$0xff] %v817_v22  ;;  %v795_v13 = vmax.f32 %v716_v23, 0.0 }
 0x16f   : > { %836 = vst [vmem:[%s1634_s18 + $0x90] sm:$0xff] %v794_v24 }
 0x170   : > { %837 = vst [vmem:[%s1634_s18 + $0x98] sm:$0xff] %v795_v13  ;;  %v719_v25 = vpop.f32.mrb[20].mxu0 }
 0x171   : > { %v720_v26 = vadd.f32 %v719_v25, %v1629_v15  ;;  %v721_v27 = vpop.f32.mrb[21].mxu0 }
 0x172   : > { %v722_v28 = vadd.f32 %v721_v27, %v1629_v15  ;;  %v723_v14 = vpop.f32.mrb[22].mxu0  ;;  %867 = sbr.rel (!%p1384_p9) target bundleno = 407 (0x197), region = 40 }
 0x173   : > { %v796_v29 = vmax.f32 %v720_v26, 0.0  ;;  %v724_v30 = vadd.f32 %v723_v14, %v1631_v16  ;;  %v725_v31 = vpop.f32.mrb[23].mxu0 }
 0x174   : > { %v797_v32 = vmax.f32 %v722_v28, 0.0  ;;  %v726_v9 = vadd.f32 %v725_v31, %v1631_v16 }
 0x175   : > { %838 = vst [vmem:[%s1634_s18 + $0xa0] sm:$0xff] %v796_v29  ;;  %v798_v33 = vmax.f32 %v724_v30, 0.0 }
 0x176   : > { %839 = vst [vmem:[%s1634_s18 + $0xa8] sm:$0xff] %v797_v32  ;;  %v799_v34 = vmax.f32 %v726_v9, 0.0 }
 0x177   : > { %840 = vst [vmem:[%s1634_s18 + $0xb0] sm:$0xff] %v798_v33 }
 0x178   : > { %841 = vst [vmem:[%s1634_s18 + $0xb8] sm:$0xff] %v799_v34 }
 0x179   : > { %s1787_s8 = smov (!%p870_p8, %s869_s8), 2 }
 0x17a   : > { %s1703_s9 = smul.u32 2688, %s1787_s8 }
 0x17c   : > { %s874_s10 = ssub.s32 5376, %s1703_s9 }
 0x17d   : > { %875 = vsyncadd %s861_s19, %s874_s10  ;;  %p1038_p9 = scmp.ne.s32.totalorder %s1703_s9, 0  ;;  %s1046_s24 = sshll.u32 %s1300_s15, 8 }
 0x17e   : > { %s1713_s28 = scalar_lea.hbm %s1772_s3, %s1046_s24  ;;  %s1040_s29 = sshll.u32 %s1787_s8, 3 }
 0x17f   : > { %s883_s23 = sshll.u32 %s1634_s18, 4  ;;  %s1314_s4 = smov [#allocation5]   ;;  %s1717_s23 = int_to_ptr.vmem [resolvable:$true] %s883_s23 }
 0x180   : > { %s1226_s30 = scalar_lea.vmem %s1717_s23, %s1703_s9  ;;  %s1230_s6 = sshll.u32 %s1314_s4, 4  ;;  %s1231_s6 = int_to_ptr.vmem [resolvable:$false] %s1230_s6 }
 0x181   : > { %p1227_p0 = scmp.ne.s32.totalorder %s1717_s23, %s1226_s30  ;;  %s1232_s15 = scalar_lea.vmem %s1231_s6, 10752 }
 0x182   : > { %p1233_p13 = scmp.lt.s32.totalorder %s1717_s23, %s1231_s6  ;;  %p1234_p1 = scmp.lt.s32.totalorder %s1232_s15, %s1226_s30 }
 0x183   : > { %p1228_p10 = pnand %p1227_p0, %p1038_p9 }
 0x184   : > { %p1235_p2 = por %p1234_p1, %p1233_p13 }
 0x185   : > { %p1229_p12 = pneg %p1228_p10 }
 0x187   : > { %p1236_p4 = pnand %p1235_p2, %p1229_p12 }
 0x189   : > { %1239 = shalt.err (!%p1236_p4)
}
 0x18a   : > { %s1240_s11 = scalar_lea.hbm %s1713_s28, %s1703_s9  ;;  %s1244_s7 = scalar_lea.hbm %s1772_s3, 18816 }
 0x18b   : > { %p1241_p5 = scmp.ne.s32.totalorder %s1713_s28, %s1240_s11  ;;  %p1245_p7 = scmp.lt.u32.totalorder %s1713_s28, %s1772_s3 }
 0x18c   : > { %p1246_p11 = scmp.lt.u32.totalorder %s1244_s7, %s1240_s11  ;;  %p1248_p0 = scmp.lt.u32.totalorder %s1240_s11, %s1713_s28 }
 0x18d   : > { %p1242_p6 = pnand %p1241_p5, %p1038_p9 }
 0x18e   : > { %p1247_p8 = por %p1246_p11, %p1245_p7 }
 0x18f   : > { %p1243_p3 = pneg %p1242_p6 }
 0x190   : > { %p1249_p10 = por %p1248_p0, %p1247_p8 }
 0x192   : > { %p1250_p12 = pnand %p1249_p10, %p1243_p3 }
 0x194   : > { %1253 = shalt.err (!%p1250_p12)
}
 0x195   : > { %s1315_s21 = smov 256   ;;  %s1316_s22 = smov 896  }
 0x196   : > { %889 = dma.vmem_to_hbm [thread:$0]  (%p1038_p9), %s1717_s23, %s1703_s9, %s1713_s28, %s861_s19, %s1315_s21, %s1316_s22, %s1040_s29  }
 0x197 PF: > { %p1078_p13 = scmp.ge.s32.totalorder %s1308_s17, 2  ;;  %s898_s30 = sand.u32 1, %s1288_s12  }
 0x198   : > { %p1776_p1 = scmp.ne.s32.totalorder %s1775_s26, 0  ;;  %s899_s4 = scalar_lea.sflag [#allocation4], %s898_s30 }
 0x19a   : > { %p1075_p2 = pnand %p1078_p13, %p1776_p1 }
 0x19c   : > { %1283 = dma.done.wait (!%p1075_p2), %s899_s4, 5376  }
 0x19d   : > { %1285 = vsyncadd (!%p1075_p2), %s899_s4, 4294961920  ;;  %s19_s17 = sadd.s32 1, %s1308_s17   ;;  %s1777_s12 = smov %s1292_s13 }
 0x19e   : > { %p16_p4 = scmp.ge.s32.totalorder %s19_s17, 6   ;;  %s1778_s13 = smov %s1296_s14 }
 0x19f   : > { %s1779_s14 = smov %s1389_s25  ;;  %s1780_s15 = smov %s1304_s16 }
 0x1a0   : > { %s1781_s16 = smov %s1783_s20  ;;  %18 = sbr.rel (!%p16_p4) target bundleno = 6 (0x6), region = 77 }
 0x1a7   :  { %904 = vsyncpa [#allocation3], 1 }
 0x1a8   :  { %906 = vsyncpa [#allocation3 + $0x1], 1 }
 0x1a9   :  { %907 = vsyncpa [#allocation4], 1 }
 0x1aa   :  { %909 = vsyncpa [#allocation4 + $0x1], 1 }

</bundles_post_ra>
